<compile_context>
chip_gen: v5e
topology: v5e:2x2
jax: 0.10.0
libtpu: 0.0.40
codegen_flags: <defaults>
</compile_context>

<pallas_src>
import math
from functools import partial

import jax
import jax.numpy as jnp
from jax.experimental import pallas as pl
from jax.experimental.pallas import tpu as pltpu

LANE = 128


def _rup(x, m):
    return ((x + m - 1) // m) * m


def _vmem_capacity_bytes():
    try:
        return int(pltpu.get_tpu_info().vmem_capacity_bytes)
    except Exception:
        return 64 * 2**20  # conservative: v7x per-TC VMEM


# --------------------------------------------------------------------------- #
# Kernel
# --------------------------------------------------------------------------- #
def vae_decoder_kernel(z_ref, *refs, n_layers, true_dims, eps, negative_slope):
    """refs = [w0, vec0, w1, vec1, ..., w_head, b_head, out_ref].

    w_i      : (d_in_pad, d_out_pad)  bf16, pre-transposed (h @ w == Linear(h))
    vec_i    : (3, d_out_pad)         f32, rows = [bias, gamma, beta]
    w_head   : (d_last_pad, head_pad) bf16, [W_mu^T | W_logvar^T | 0-pad]
    b_head   : (1, head_pad)          f32
    out_ref  : (block_b, head_pad)
    Padded feature lanes carry exact zeros throughout (weights/bias/gamma/beta
    are zero-padded), so one-pass LN sums over the padded width equal the sums
    over the true width.
    """
    out_ref = refs[-1]
    w_head_ref = refs[2 * n_layers]
    b_head_ref = refs[2 * n_layers + 1]

    h = z_ref[...].astype(jnp.float32)                         # (Bt, d0_pad)

    # Static Python loop -> unrolled at trace time, one MXU matmul per layer.
    for i in range(n_layers):
        w = refs[2 * i][...]                                   # (d_in_pad, d_out_pad) bf16
        vec = refs[2 * i + 1][...]                             # (3, d_out_pad) f32
        b, gamma, beta = vec[0:1, :], vec[1:2, :], vec[2:3, :]

        # Linear: bf16 MXU inputs, f32 accumulation.
        h = jnp.dot(h.astype(jnp.bfloat16), w,
                    preferred_element_type=jnp.float32) + b

        # LayerNorm over the TRUE feature count, one-pass statistics.
        inv_d = 1.0 / float(true_dims[i])
        s1 = jnp.sum(h, axis=-1, keepdims=True)
        s2 = jnp.sum(h * h, axis=-1, keepdims=True)
        mean = s1 * inv_d
        var = s2 * inv_d - mean * mean
        h = (h - mean) * jax.lax.rsqrt(var + eps)              # rsqrt -> EUP
        h = h * gamma + beta                                   # pad lanes -> 0

        # LeakyReLU (PyTorch default negative_slope = 0.01).
        h = jnp.where(h >= 0, h, negative_slope * h)
        # TODO(synk): Dropout(0.2) is identity in eval mode; training-mode
        # masking would need pltpu.prng_seed / pltpu.prng_random_bits.

    # Fused output heads: one dot, one lane-dense (>=128 wide) output slab.
    out = jnp.dot(h.astype(jnp.bfloat16), w_head_ref[...],
                  preferred_element_type=jnp.float32) + b_head_ref[...]
    out_ref[...] = out.astype(out_ref.dtype)


# --------------------------------------------------------------------------- #
# Parameter preparation (padding / fusion / packing) — done once, outside jit
# --------------------------------------------------------------------------- #
def prepare_decoder_params(params):
    """Pad feature dims to multiples of 128, fuse mu/logvar heads, stack
    (bias, gamma, beta) per layer, cast matmul weights to bf16."""
    layers = params["layers"]
    dims_true = [layers[0]["w_t"].shape[0]] + [l["w_t"].shape[1] for l in layers]
    dims_pad = [_rup(d, LANE) for d in dims_true]

    prepared_layers = []
    for i, lyr in enumerate(layers):
        d_in, d_out = dims_true[i], dims_true[i + 1]
        d_in_p, d_out_p = dims_pad[i], dims_pad[i + 1]
        w = jnp.zeros((d_in_p, d_out_p), jnp.float32)
        w = w.at[:d_in, :d_out].set(lyr["w_t"]).astype(jnp.bfloat16)
        vec = jnp.zeros((3, d_out_p), jnp.float32)
        vec = vec.at[0, :d_out].set(lyr["b"][0])      # bias   (0 on pad lanes)
        vec = vec.at[1, :d_out].set(lyr["gamma"][0])  # gamma  (0 on pad lanes)
        vec = vec.at[2, :d_out].set(lyr["beta"][0])   # beta   (0 on pad lanes)
        prepared_layers.append((w, vec))

    output_dim = params["w_mu_t"].shape[1]
    d_last, d_last_p = dims_true[-1], dims_pad[-1]
    head_true = 2 * output_dim
    head_pad = _rup(head_true, LANE)

    w_head = jnp.zeros((d_last_p, head_pad), jnp.float32)
    w_head = w_head.at[:d_last, :output_dim].set(params["w_mu_t"])
    w_head = w_head.at[:d_last, output_dim:head_true].set(params["w_lv_t"])
    w_head = w_head.astype(jnp.bfloat16)
    b_head = jnp.zeros((1, head_pad), jnp.float32)
    b_head = b_head.at[0, :output_dim].set(params["b_mu"][0])
    b_head = b_head.at[0, output_dim:head_true].set(params["b_lv"][0])

    meta = dict(dims_true=tuple(dims_true), dims_pad=tuple(dims_pad),
                output_dim=output_dim, head_pad=head_pad)
    return {"layers": prepared_layers, "w_head": w_head, "b_head": b_head}, meta


# --------------------------------------------------------------------------- #
# Batch-tile selection
# --------------------------------------------------------------------------- #
def _pick_block_b(batch_padded, per_row_bytes, vmem_budget_bytes):
    max_rows = max(8, vmem_budget_bytes // max(per_row_bytes, 1))
    # Small/medium batches: one grid step (per-step overhead ~0.35us dominates).
    if batch_padded <= min(max_rows, 2048):
        return batch_padded
    cap = int(min(2048, max_rows))
    for step in (256, 128, 8):      # fill the MXU M dimension where possible
        cands = [c for c in range(step, cap + 1, step) if batch_padded % c == 0]
        if cands:
            even = [c for c in cands if (batch_padded // c) % 2 == 0]
            return max(even) if even else max(cands)   # even steps -> v7x 2 TCs
    return 8


# --------------------------------------------------------------------------- #
# Wrapper
# --------------------------------------------------------------------------- #
def vae_decoder(z, kparams, meta, *, block_b=None):
    """z: (B, latent_dim) f32. kparams/meta from prepare_decoder_params."""
    B, d0 = z.shape
    dims_true, dims_pad = meta["dims_true"], meta["dims_pad"]
    assert d0 == dims_true[0], (d0, dims_true)
    output_dim, head_pad = meta["output_dim"], meta["head_pad"]
    n_layers = len(kparams["layers"])

    # Pad batch to a multiple of 8 (sublane) and latent to its padded width.
    B_pad = max(_rup(B, 8), 8)
    d0_pad = dims_pad[0]
    z_p = jnp.zeros((B_pad, d0_pad), z.dtype).at[:B, :d0].set(z)

    # Flatten kernel params.
    flat = []
    for w, vec in kparams["layers"]:
        flat += [w, vec]
    flat += [kparams["w_head"], kparams["b_head"]]
    param_bytes = sum(int(p.size) * p.dtype.itemsize for p in flat)

    # VMEM budget: per-row bytes for double-buffered z/out + live intermediates.
    max_dim_pad = max(list(dims_pad) + [head_pad])
    per_row_bytes = 4 * (2 * d0_pad + 2 * head_pad + 3 * max_dim_pad)
    vmem_cap = _vmem_capacity_bytes()
    vmem_budget = max(int(vmem_cap * 0.4) - param_bytes, 1 << 20)
    if block_b is None:
        block_b = _pick_block_b(B_pad, per_row_bytes, vmem_budget)
    assert B_pad % block_b == 0, (B_pad, block_b)
    grid = (B_pad // block_b,)
    multi_step = grid[0] > 1

    # BlockSpecs. Parameters use a constant index_map; when the grid has more
    # than one step they are single-buffered (they never change per step).
    def param_spec(shape):
        if multi_step:
            return pl.BlockSpec(shape, lambda i: (0, 0),
                                pipeline_mode=pl.Buffered(1))
        return pl.BlockSpec(shape, lambda i: (0, 0))

    in_specs = [pl.BlockSpec((block_b, d0_pad), lambda i: (i, 0))]
    for p in flat:
        in_specs.append(param_spec(p.shape))

    out_specs = pl.BlockSpec((block_b, head_pad), lambda i: (i, 0))
    # TODO(synk): emit bf16 outputs here if downstream consumers accept it
    # (halves writeback bytes for realistic output_dim).
    out_shape = jax.ShapeDtypeStruct((B_pad, head_pad), z.dtype)

    # Explicit VMEM limit, clamped to 3/4 of this chip's capacity.
    est_bytes = 2 * param_bytes + block_b * per_row_bytes + (2 << 20)
    vmem_limit = int(min(max(2 * est_bytes, 16 * 2**20), int(vmem_cap * 0.75)))

    # Advisory cost estimate for XLA's scheduler (padded dims).
    flops = 0
    d_prev = d0_pad
    for dp in dims_pad[1:]:
        flops += 2 * B_pad * d_prev * dp + 10 * B_pad * dp
        d_prev = dp
    flops += 2 * B_pad * d_prev * head_pad
    bytes_accessed = int(z_p.size) * 4 + param_bytes + B_pad * head_pad * 4
    cost = pl.CostEstimate(flops=int(flops), transcendentals=int(B_pad * n_layers),
                           bytes_accessed=int(bytes_accessed))

    kernel = partial(vae_decoder_kernel, n_layers=n_layers,
                     true_dims=tuple(dims_true[1:]), eps=1e-5,
                     negative_slope=0.01)

    out = pl.pallas_call(
        kernel,
        out_shape=out_shape,
        grid_spec=pltpu.PrefetchScalarGridSpec(
            num_scalar_prefetch=0,
            grid=grid,
            in_specs=in_specs,
            out_specs=out_specs,
        ),
        compiler_params=pltpu.CompilerParams(
            dimension_semantics=("parallel",),
            vmem_limit_bytes=vmem_limit),
        cost_estimate=cost,
    )(z_p, *flat)

    mu = out[:B, :output_dim]
    logvar = out[:B, output_dim:2 * output_dim]
    return mu, logvar


# --------------------------------------------------------------------------- #
# Pure-JAX reference (mirrors the PyTorch forward, eval mode, f32)
# --------------------------------------------------------------------------- #
def reference_vae_decoder(z, params, eps=1e-5, negative_slope=0.01):
    h = z
    for lyr in params["layers"]:
        h = h @ lyr["w_t"] + lyr["b"][0]
        mean = jnp.mean(h, axis=-1, keepdims=True)
        var = jnp.mean(jnp.square(h - mean), axis=-1, keepdims=True)
        h = (h - mean) / jnp.sqrt(var + eps)
        h = h * lyr["gamma"][0] + lyr["beta"][0]
        h = jnp.where(h >= 0, h, negative_slope * h)
    mu = h @ params["w_mu_t"] + params["b_mu"][0]
    logvar = h @ params["w_lv_t"] + params["b_lv"][0]
    return mu, logvar


def init_params(key, latent_dim, hidden_dims, output_dim):
    # Layer order matches the module: reversed(hidden_dims); heads from hidden_dims[0].
    dims = [latent_dim] + list(reversed(hidden_dims))
    n_layers = len(hidden_dims)
    keys = jax.random.split(key, 4 * n_layers + 4)
    ki = 0
    layers = []
    for d_in, d_out in zip(dims[:-1], dims[1:]):
        w_t = jax.random.normal(keys[ki], (d_in, d_out), jnp.float32) / math.sqrt(d_in); ki += 1
        b = 0.05 * jax.random.normal(keys[ki], (1, d_out), jnp.float32); ki += 1
        gamma = 1.0 + 0.1 * jax.random.normal(keys[ki], (1, d_out), jnp.float32); ki += 1
        beta = 0.1 * jax.random.normal(keys[ki], (1, d_out), jnp.float32); ki += 1
        layers.append({"w_t": w_t, "b": b, "gamma": gamma, "beta": beta})
    w_mu_t = jax.random.normal(keys[ki], (dims[-1], output_dim), jnp.float32) / math.sqrt(dims[-1]); ki += 1
    b_mu = 0.05 * jax.random.normal(keys[ki], (1, output_dim), jnp.float32); ki += 1
    w_lv_t = jax.random.normal(keys[ki], (dims[-1], output_dim), jnp.float32) / math.sqrt(dims[-1]); ki += 1
    b_lv = 0.05 * jax.random.normal(keys[ki], (1, output_dim), jnp.float32); ki += 1
    return {"layers": layers, "w_mu_t": w_mu_t, "b_mu": b_mu,
            "w_lv_t": w_lv_t, "b_lv": b_lv}


if __name__ == "__main__":
    key = jax.random.PRNGKey(0)
    k_z, k_p = jax.random.split(key)

    B = 16
    latent_dim = 16
    hidden_dims = [32, 64]   # module walks reversed(hidden_dims): 16 -> 64 -> 32
    output_dim = 32

    z = jax.random.normal(k_z, (B, latent_dim), jnp.float32)
    params = init_params(k_p, latent_dim, hidden_dims, output_dim)
    kparams, meta = prepare_decoder_params(params)

    mu, logvar = vae_decoder(z, kparams, meta)
    mu = jax.block_until_ready(mu)
    logvar = jax.block_until_ready(logvar)

    ref_mu, ref_lv = reference_vae_decoder(z, params)
    assert mu.shape == (B, output_dim), mu.shape
    assert logvar.shape == (B, output_dim), logvar.shape
    # bf16 MXU inputs -> slightly looser tolerance vs. the f32 reference.
    assert jnp.allclose(mu, ref_mu, atol=5e-2, rtol=5e-2), \
        float(jnp.max(jnp.abs(mu - ref_mu)))
    assert jnp.allclose(logvar, ref_lv, atol=5e-2, rtol=5e-2), \
        float(jnp.max(jnp.abs(logvar - ref_lv)))

    print("KERNEL_OK")
</pallas_src>

<mosaic_0001>
module attributes {stable_mosaic.version = 11 : i64} {
  func.func @vae_decoder_kernel(%arg0: i32, %arg1: memref<16x128xf32, #tpu.memory_space<vmem>>, %arg2: memref<128x128xbf16, #tpu.memory_space<vmem>>, %arg3: memref<3x128xf32, #tpu.memory_space<vmem>>, %arg4: memref<128x128xbf16, #tpu.memory_space<vmem>>, %arg5: memref<3x128xf32, #tpu.memory_space<vmem>>, %arg6: memref<128x128xbf16, #tpu.memory_space<vmem>>, %arg7: memref<1x128xf32, #tpu.memory_space<vmem>>, %arg8: memref<16x128xf32, #tpu.memory_space<vmem>>) attributes {dimension_semantics = [#tpu.dimension_semantics<parallel>], iteration_bounds = array<i64: 1>, scalar_prefetch = 0 : i64, scratch_operands = 0 : i64, tpu.core_type = #tpu.core_type<tc>, window_params = [{transform_indices = @transform_0, window_bounds = array<i64: 16, 128>}, {pipeline_mode = #tpu.pipeline_mode<synchronous>, transform_indices = @transform_1, window_bounds = array<i64: 128, 128>}, {pipeline_mode = #tpu.pipeline_mode<synchronous>, transform_indices = @transform_2, window_bounds = array<i64: 3, 128>}, {pipeline_mode = #tpu.pipeline_mode<synchronous>, transform_indices = @transform_3, window_bounds = array<i64: 128, 128>}, {pipeline_mode = #tpu.pipeline_mode<synchronous>, transform_indices = @transform_4, window_bounds = array<i64: 3, 128>}, {pipeline_mode = #tpu.pipeline_mode<synchronous>, transform_indices = @transform_5, window_bounds = array<i64: 128, 128>}, {pipeline_mode = #tpu.pipeline_mode<synchronous>, transform_indices = @transform_6, window_bounds = array<i64: 1, 128>}, {transform_indices = @transform_7, window_bounds = array<i64: 16, 128>}]} {
    %c0 = arith.constant 0 : index
    %c0_0 = arith.constant 0 : index
    %0 = vector.load %arg1[%c0, %c0_0] : memref<16x128xf32, #tpu.memory_space<vmem>>, vector<16x128xf32>
    %c0_1 = arith.constant 0 : index
    %c0_2 = arith.constant 0 : index
    %1 = vector.load %arg2[%c0_1, %c0_2] : memref<128x128xbf16, #tpu.memory_space<vmem>>, vector<128x128xbf16>
    %c0_3 = arith.constant 0 : index
    %c0_4 = arith.constant 0 : index
    %2 = vector.load %arg3[%c0_3, %c0_4] : memref<3x128xf32, #tpu.memory_space<vmem>>, vector<3x128xf32>
    %3 = vector.extract_strided_slice %2 {offsets = [0, 0], sizes = [1, 128], strides = [1, 1]} : vector<3x128xf32> to vector<1x128xf32>
    %4 = vector.extract_strided_slice %2 {offsets = [1, 0], sizes = [1, 128], strides = [1, 1]} : vector<3x128xf32> to vector<1x128xf32>
    %5 = vector.extract_strided_slice %2 {offsets = [2, 0], sizes = [1, 128], strides = [1, 1]} : vector<3x128xf32> to vector<1x128xf32>
    %6 = arith.truncf %0 : vector<16x128xf32> to vector<16x128xbf16>
    %cst = arith.constant dense<0.000000e+00> : vector<16x128xf32>
    %7 = tpu.matmul %6, %1, %cst {dimension_numbers = #tpu.dot_dimension_numbers<[1], [0], [0], [1], [0, 0, 1, 1], [], []>} : vector<16x128xbf16>, vector<128x128xbf16>, vector<16x128xf32> -> vector<16x128xf32>
    %8 = vector.broadcast %3 : vector<1x128xf32> to vector<16x128xf32>
    %9 = arith.addf %7, %8 : vector<16x128xf32>
    %cst_5 = arith.constant dense<0.000000e+00> : vector<16xf32>
    %10 = vector.multi_reduction <add>, %9, %cst_5 [1] : vector<16x128xf32> to vector<16xf32>
    %11 = vector.shape_cast %10 : vector<16xf32> to vector<16x1xf32>
    %12 = arith.mulf %9, %9 : vector<16x128xf32>
    %cst_6 = arith.constant dense<0.000000e+00> : vector<16xf32>
    %13 = vector.multi_reduction <add>, %12, %cst_6 [1] : vector<16x128xf32> to vector<16xf32>
    %14 = vector.shape_cast %13 : vector<16xf32> to vector<16x1xf32>
    %cst_7 = arith.constant 1.562500e-02 : f32
    %15 = vector.broadcast %cst_7 : f32 to vector<16x1xf32>
    %16 = arith.mulf %11, %15 : vector<16x1xf32>
    %cst_8 = arith.constant 1.562500e-02 : f32
    %17 = vector.broadcast %cst_8 : f32 to vector<16x1xf32>
    %18 = arith.mulf %14, %17 : vector<16x1xf32>
    %19 = arith.mulf %16, %16 : vector<16x1xf32>
    %20 = arith.subf %18, %19 : vector<16x1xf32>
    %21 = vector.broadcast %16 : vector<16x1xf32> to vector<16x128xf32>
    %22 = arith.subf %9, %21 : vector<16x128xf32>
    %cst_9 = arith.constant 9.99999974E-6 : f32
    %23 = vector.broadcast %cst_9 : f32 to vector<16x1xf32>
    %24 = arith.addf %20, %23 : vector<16x1xf32>
    %25 = math.rsqrt %24 : vector<16x1xf32>
    %26 = vector.broadcast %25 : vector<16x1xf32> to vector<16x128xf32>
    %27 = arith.mulf %22, %26 : vector<16x128xf32>
    %28 = vector.broadcast %4 : vector<1x128xf32> to vector<16x128xf32>
    %29 = arith.mulf %27, %28 : vector<16x128xf32>
    %30 = vector.broadcast %5 : vector<1x128xf32> to vector<16x128xf32>
    %31 = arith.addf %29, %30 : vector<16x128xf32>
    %cst_10 = arith.constant 0.000000e+00 : f32
    %32 = vector.broadcast %cst_10 : f32 to vector<16x128xf32>
    %33 = arith.cmpf oge, %31, %32 : vector<16x128xf32>
    %cst_11 = arith.constant 0.00999999977 : f32
    %34 = vector.broadcast %cst_11 : f32 to vector<16x128xf32>
    %35 = arith.mulf %34, %31 : vector<16x128xf32>
    %36 = arith.select %33, %31, %35 : vector<16x128xi1>, vector<16x128xf32>
    %c0_12 = arith.constant 0 : index
    %c0_13 = arith.constant 0 : index
    %37 = vector.load %arg4[%c0_12, %c0_13] : memref<128x128xbf16, #tpu.memory_space<vmem>>, vector<128x128xbf16>
    %c0_14 = arith.constant 0 : index
    %c0_15 = arith.constant 0 : index
    %38 = vector.load %arg5[%c0_14, %c0_15] : memref<3x128xf32, #tpu.memory_space<vmem>>, vector<3x128xf32>
    %39 = vector.extract_strided_slice %38 {offsets = [0, 0], sizes = [1, 128], strides = [1, 1]} : vector<3x128xf32> to vector<1x128xf32>
    %40 = vector.extract_strided_slice %38 {offsets = [1, 0], sizes = [1, 128], strides = [1, 1]} : vector<3x128xf32> to vector<1x128xf32>
    %41 = vector.extract_strided_slice %38 {offsets = [2, 0], sizes = [1, 128], strides = [1, 1]} : vector<3x128xf32> to vector<1x128xf32>
    %42 = arith.truncf %36 : vector<16x128xf32> to vector<16x128xbf16>
    %cst_16 = arith.constant dense<0.000000e+00> : vector<16x128xf32>
    %43 = tpu.matmul %42, %37, %cst_16 {dimension_numbers = #tpu.dot_dimension_numbers<[1], [0], [0], [1], [0, 0, 1, 1], [], []>} : vector<16x128xbf16>, vector<128x128xbf16>, vector<16x128xf32> -> vector<16x128xf32>
    %44 = vector.broadcast %39 : vector<1x128xf32> to vector<16x128xf32>
    %45 = arith.addf %43, %44 : vector<16x128xf32>
    %cst_17 = arith.constant dense<0.000000e+00> : vector<16xf32>
    %46 = vector.multi_reduction <add>, %45, %cst_17 [1] : vector<16x128xf32> to vector<16xf32>
    %47 = vector.shape_cast %46 : vector<16xf32> to vector<16x1xf32>
    %48 = arith.mulf %45, %45 : vector<16x128xf32>
    %cst_18 = arith.constant dense<0.000000e+00> : vector<16xf32>
    %49 = vector.multi_reduction <add>, %48, %cst_18 [1] : vector<16x128xf32> to vector<16xf32>
    %50 = vector.shape_cast %49 : vector<16xf32> to vector<16x1xf32>
    %cst_19 = arith.constant 3.125000e-02 : f32
    %51 = vector.broadcast %cst_19 : f32 to vector<16x1xf32>
    %52 = arith.mulf %47, %51 : vector<16x1xf32>
    %cst_20 = arith.constant 3.125000e-02 : f32
    %53 = vector.broadcast %cst_20 : f32 to vector<16x1xf32>
    %54 = arith.mulf %50, %53 : vector<16x1xf32>
    %55 = arith.mulf %52, %52 : vector<16x1xf32>
    %56 = arith.subf %54, %55 : vector<16x1xf32>
    %57 = vector.broadcast %52 : vector<16x1xf32> to vector<16x128xf32>
    %58 = arith.subf %45, %57 : vector<16x128xf32>
    %cst_21 = arith.constant 9.99999974E-6 : f32
    %59 = vector.broadcast %cst_21 : f32 to vector<16x1xf32>
    %60 = arith.addf %56, %59 : vector<16x1xf32>
    %61 = math.rsqrt %60 : vector<16x1xf32>
    %62 = vector.broadcast %61 : vector<16x1xf32> to vector<16x128xf32>
    %63 = arith.mulf %58, %62 : vector<16x128xf32>
    %64 = vector.broadcast %40 : vector<1x128xf32> to vector<16x128xf32>
    %65 = arith.mulf %63, %64 : vector<16x128xf32>
    %66 = vector.broadcast %41 : vector<1x128xf32> to vector<16x128xf32>
    %67 = arith.addf %65, %66 : vector<16x128xf32>
    %cst_22 = arith.constant 0.000000e+00 : f32
    %68 = vector.broadcast %cst_22 : f32 to vector<16x128xf32>
    %69 = arith.cmpf oge, %67, %68 : vector<16x128xf32>
    %cst_23 = arith.constant 0.00999999977 : f32
    %70 = vector.broadcast %cst_23 : f32 to vector<16x128xf32>
    %71 = arith.mulf %70, %67 : vector<16x128xf32>
    %72 = arith.select %69, %67, %71 : vector<16x128xi1>, vector<16x128xf32>
    %73 = arith.truncf %72 : vector<16x128xf32> to vector<16x128xbf16>
    %c0_24 = arith.constant 0 : index
    %c0_25 = arith.constant 0 : index
    %74 = vector.load %arg6[%c0_24, %c0_25] : memref<128x128xbf16, #tpu.memory_space<vmem>>, vector<128x128xbf16>
    %cst_26 = arith.constant dense<0.000000e+00> : vector<16x128xf32>
    %75 = tpu.matmul %73, %74, %cst_26 {dimension_numbers = #tpu.dot_dimension_numbers<[1], [0], [0], [1], [0, 0, 1, 1], [], []>} : vector<16x128xbf16>, vector<128x128xbf16>, vector<16x128xf32> -> vector<16x128xf32>
    %c0_27 = arith.constant 0 : index
    %c0_28 = arith.constant 0 : index
    %76 = vector.load %arg7[%c0_27, %c0_28] : memref<1x128xf32, #tpu.memory_space<vmem>>, vector<1x128xf32>
    %77 = vector.broadcast %76 : vector<1x128xf32> to vector<16x128xf32>
    %78 = arith.addf %75, %77 : vector<16x128xf32>
    %c0_29 = arith.constant 0 : index
    %c0_30 = arith.constant 0 : index
    %79 = vector.load %arg8[%c0_29, %c0_30] : memref<16x128xf32, #tpu.memory_space<vmem>>, vector<16x128xf32>
    tpu.vector_store %arg8[%c0_29, %c0_30], %78 {strides = array<i32>} : memref<16x128xf32, #tpu.memory_space<vmem>>, vector<16x128xf32>,
    return
  }
  func.func @transform_0(%arg0: i32) -> (i32, i32) {
    %c0_i32 = arith.constant 0 : i32
    %c0_i32_0 = arith.constant 0 : i32
    return %arg0, %c0_i32 : i32, i32
  }
  func.func @transform_1(%arg0: i32) -> (i32, i32) {
    %c0_i32 = arith.constant 0 : i32
    %c0_i32_0 = arith.constant 0 : i32
    %c0_i32_1 = arith.constant 0 : i32
    return %c0_i32, %c0_i32_0 : i32, i32
  }
  func.func @transform_2(%arg0: i32) -> (i32, i32) {
    %c0_i32 = arith.constant 0 : i32
    %c0_i32_0 = arith.constant 0 : i32
    %c0_i32_1 = arith.constant 0 : i32
    return %c0_i32, %c0_i32_0 : i32, i32
  }
  func.func @transform_3(%arg0: i32) -> (i32, i32) {
    %c0_i32 = arith.constant 0 : i32
    %c0_i32_0 = arith.constant 0 : i32
    %c0_i32_1 = arith.constant 0 : i32
    return %c0_i32, %c0_i32_0 : i32, i32
  }
  func.func @transform_4(%arg0: i32) -> (i32, i32) {
    %c0_i32 = arith.constant 0 : i32
    %c0_i32_0 = arith.constant 0 : i32
    %c0_i32_1 = arith.constant 0 : i32
    return %c0_i32, %c0_i32_0 : i32, i32
  }
  func.func @transform_5(%arg0: i32) -> (i32, i32) {
    %c0_i32 = arith.constant 0 : i32
    %c0_i32_0 = arith.constant 0 : i32
    %c0_i32_1 = arith.constant 0 : i32
    return %c0_i32, %c0_i32_0 : i32, i32
  }
  func.func @transform_6(%arg0: i32) -> (i32, i32) {
    %c0_i32 = arith.constant 0 : i32
    %c0_i32_0 = arith.constant 0 : i32
    %c0_i32_1 = arith.constant 0 : i32
    return %c0_i32, %c0_i32_0 : i32, i32
  }
  func.func @transform_7(%arg0: i32) -> (i32, i32) {
    %c0_i32 = arith.constant 0 : i32
    %c0_i32_0 = arith.constant 0 : i32
    return %arg0, %c0_i32 : i32, i32
  }
}

</mosaic_0001>

<bundles_post_ra>
// kernel: tpu_custom_call.1
= control target key start
LH: loop header
LB: loop body
LE: loop exit
PB: predicated region body
PF: predicated region fallthrough
CT: control target
= control target key end

     0   :  { %12 = vsyncpa [#allocation3], 0  ;;  %s930_s0 = inlined_call_operand.hbm [shape: f32[16,128], index: 0, kind: input, shape index: {}]   ;;  %s931_s1 = inlined_call_operand.hbm [shape: bf16[128,128], index: 1, kind: input, shape index: {}]   ;;  %s932_s2 = inlined_call_operand.hbm [shape: f32[3,128], index: 2, kind: input, shape index: {}]   ;;  %s933_s3 = inlined_call_operand.hbm [shape: bf16[128,128], index: 3, kind: input, shape index: {}]   ;;  %s934_s4 = inlined_call_operand.hbm [shape: f32[3,128], index: 4, kind: input, shape index: {}]   ;;  %s935_s5 = inlined_call_operand.hbm [shape: bf16[128,128], index: 5, kind: input, shape index: {}]   ;;  %s936_s6 = inlined_call_operand.vmem [shape: f32[1,128], index: 6, kind: input, shape index: {}]   ;;  %s937_s7 = inlined_call_operand.hbm [shape: f32[16,128], index: 7, kind: output, shape index: {}]  }
   0x1   :  { %13 = vsyncpa [#allocation6], 0 }
   0x2   :  { %14 = vsyncpa [#allocation9], 0 }
   0x3   :  { %15 = vsyncpa [#allocation12], 0  ;;  %s34_s26 = sshll.u32 %s931_s1, 4  ;;  %s35_s26 = int_to_ptr.hbm [resolvable:$true] %s34_s26 }
   0x4   :  { %16 = vsyncpa [#allocation4], 0  ;;  %s818_s27 = smov [#allocation5]   ;;  %s58_s8 = sshll.u32 %s933_s3, 4  ;;  %s59_s8 = int_to_ptr.hbm [resolvable:$true] %s58_s8 }
   0x5   :  { %s36_s28 = sshll.u32 %s818_s27, 4  ;;  %s819_s9 = smov 64   ;;  %s37_s28 = int_to_ptr.vmem [resolvable:$true] %s36_s28 }
   0x6   :  { %s820_s10 = smov 4   ;;  %s821_s11 = smov [#allocation8]  }
   0x7   :  { %42 = dma.hbm_to_vmem [thread:$0]  %s35_s26, 1024, %s37_s28, [#allocation6], %s819_s9, %s819_s9, %s820_s10  }
   0x8   :  { %s60_s12 = sshll.u32 %s821_s11, 4  ;;  %s21_s14 = sshll.u32 %s930_s0, 4  ;;  %s61_s12 = int_to_ptr.vmem [resolvable:$true] %s60_s12  ;;  %s22_s14 = int_to_ptr.hbm [resolvable:$true] %s21_s14 }
   0x9   :  { %66 = dma.hbm_to_vmem [thread:$0]  %s59_s8, 1024, %s61_s12, [#allocation9], %s819_s9, %s819_s9, %s820_s10  }
   0xa   :  { %s822_s3 = smov [#allocation2]   ;;  %s48_s18 = sshll.u32 %s932_s2, 4  ;;  %s49_s18 = int_to_ptr.hbm [resolvable:$true] %s48_s18 }
   0xb   :  { %s23_s15 = sshll.u32 %s822_s3, 4  ;;  %s823_s19 = smov 128   ;;  %s24_s15 = int_to_ptr.vmem [resolvable:$true] %s23_s15 }
   0xc   :  { %s824_s20 = smov 8   ;;  %s825_s0 = smov [#allocation7]  }
   0xd   :  { %29 = dma.hbm_to_vmem [thread:$0]  %s22_s14, 256, %s24_s15, [#allocation3], %s823_s19, %s823_s19, %s824_s20  }
   0xe   :  { %s50_s21 = sshll.u32 %s825_s0, 4  ;;  %s72_s24 = sshll.u32 %s934_s4, 4  ;;  %s51_s21 = int_to_ptr.vmem [resolvable:$true] %s50_s21  ;;  %s73_s24 = int_to_ptr.hbm [resolvable:$true] %s72_s24 }
   0xf   :  { %53 = dma.hbm_to_vmem [thread:$0]  %s49_s18, 64, %s51_s21, [#allocation6]  }
  0x10   :  { %s82_s2 = sshll.u32 %s935_s5, 4  ;;  %s826_s27 = smov [#allocation10]   ;;  %s83_s2 = int_to_ptr.hbm [resolvable:$true] %s82_s2 }
  0x11   :  { %s74_s28 = sshll.u32 %s826_s27, 4  ;;  %s827_s29 = smov [#allocation11]   ;;  %s75_s28 = int_to_ptr.vmem [resolvable:$true] %s74_s28 }
  0x12   :  { %77 = dma.hbm_to_vmem [thread:$0]  %s73_s24, 64, %s75_s28, [#allocation9]  }
  0x13   :  { %s84_s30 = sshll.u32 %s827_s29, 4  ;;  %s85_s30 = int_to_ptr.vmem [resolvable:$true] %s84_s30 }
  0x14   :  { %90 = dma.hbm_to_vmem [thread:$0]  %s83_s2, 1024, %s85_s30, [#allocation12], %s819_s9, %s819_s9, %s820_s10  }
  0x15   :  { %808 = dma.done.wait [#allocation3], 256  }
  0x16   :  { %809 = vsyncadd [#allocation3], 4294967040 }
  0x17   :  { %810 = dma.done.wait [#allocation6], 1088  }
  0x18   :  { %811 = vsyncadd [#allocation6], 4294966208 }
  0x19   :  { %812 = dma.done.wait [#allocation9], 1088  }
  0x1a   :  { %813 = vsyncadd [#allocation9], 4294966208 }
  0x1b   :  { %814 = dma.done.wait [#allocation12], 1024  }
  0x1c   :  { %815 = vsyncadd [#allocation12], 4294966272  ;;  %v603_v0 = vld [vmem:[#allocation5 + $0x38] sm:$0xff]  ;;  %v602_v1 = vld [vmem:[#allocation5 + $0x30] sm:$0xff]  ;;  %s828_s8 = smov [#allocation13]   ;;  %s484_s12 = sshll.u32 %s937_s7, 4  ;;  %s485_s12 = int_to_ptr.hbm [resolvable:$true] %s484_s12 }
  0x1d   :  { %186 = vmatpush.bf16.msra.mxu0 %v603_v0  ;;  %v601_v2 = vld [vmem:[#allocation5 + $0x28] sm:$0xff]  ;;  %v600_v3 = vld [vmem:[#allocation5 + $0x20] sm:$0xff]  ;;  %v599_v4 = vld [vmem:[#allocation5 + $0x18] sm:$0xff]  ;;  %s482_s9 = sshll.u32 %s828_s8, 4  ;;  %s483_s9 = int_to_ptr.vmem [resolvable:$true] %s482_s9 }
  0x1e   :  { %v598_v5 = vld [vmem:[#allocation5 + $0x10] sm:$0xff]  ;;  %v597_v6 = vld [vmem:[#allocation5 + $0x8] sm:$0xff]  ;;  %v596_v7 = vld [vmem:[#allocation5] sm:$0xff] }
  0x1f   :  { %v117_v8 = vld [vmem:[#allocation2] sm:$0xff]  ;;  %v118_v9 = vld [vmem:[#allocation2 + $0x8] sm:$0xff]  ;;  %v899_v11 = vld [vmem:[#allocation7] sm:$0x7] }
  0x20   :  { %v136_v10 = vpack.c.bf16 %v118_v9, %v117_v8  ;;  %v137_v12 = vperm.slane %v899_v11, 0  ;;  %v611_v19 = vld [vmem:[#allocation8 + $0x38] sm:$0xff]  ;;  %v610_v20 = vld [vmem:[#allocation8 + $0x30] sm:$0xff]  ;;  %v609_v21 = vld [vmem:[#allocation8 + $0x28] sm:$0xff]  ;;  %v244_v52 = vperm.slane %v899_v11, 1  ;;  %v247_v56 = vperm.slane %v899_v11, 2 }
  0x21   :  { %187 = vmatpush.bf16.msra.mxu0 %v602_v1  ;;  %323 = vmatpush.bf16.msra.mxu1 %v611_v19  ;;  %v608_v22 = vld [vmem:[#allocation8 + $0x20] sm:$0xff]  ;;  %v607_v23 = vld [vmem:[#allocation8 + $0x18] sm:$0xff]  ;;  %v606_v26 = vld [vmem:[#allocation8 + $0x10] sm:$0xff] }
  0x22   :  { %v605_v30 = vld [vmem:[#allocation8 + $0x8] sm:$0xff]  ;;  %v604_v33 = vld [vmem:[#allocation8] sm:$0xff] }
  0x25   :  { %188 = vmatpush.bf16.msra.mxu0 %v601_v2  ;;  %324 = vmatpush.bf16.msra.mxu1 %v610_v20 }
  0x29   :  { %189 = vmatpush.bf16.msra.mxu0 %v600_v3  ;;  %325 = vmatpush.bf16.msra.mxu1 %v609_v21  ;;  %v614_v21 = vld [vmem:[#allocation11 + $0x10] sm:$0xff] }
  0x2d   :  { %190 = vmatpush.bf16.msra.mxu0 %v599_v4  ;;  %326 = vmatpush.bf16.msra.mxu1 %v608_v22 }
  0x31   :  { %191 = vmatpush.bf16.msra.mxu0 %v598_v5  ;;  %327 = vmatpush.bf16.msra.mxu1 %v607_v23 }
  0x35   :  { %192 = vmatpush.bf16.msra.mxu0 %v597_v6  ;;  %328 = vmatpush.bf16.msra.mxu1 %v606_v26  ;;  %v910_v6 = vld [vmem:[#allocation10] sm:$0x7] }
  0x39   :  { %193 = vmatpush.bf16.msra.mxu0 %v596_v7  ;;  %329 = vmatpush.bf16.msra.mxu1 %v605_v30  ;;  %v274_v7 = vperm.slane %v910_v6, 0 }
  0x3c   :  { %194 = vmatmul.bf16.vlgmr.msra.gmra.mxu0 %v136_v10 }
  0x3d   :  { %330 = vmatpush.bf16.msra.mxu1 %v604_v33 }
  0xb9   :  { %v195_v13 = vpop.f32.mrf.mxu0 }
  0xba   :  { %v196_v14 = vadd.f32 %v195_v13, %v137_v12 }
  0xbc   :  { %200 = vadd.xlane.f32.xlu0 %v196_v14  ;;  %v204_v15 = vmul.f32 %v196_v14, %v196_v14 }
  0xbe   :  { %206 = vadd.xlane.f32.xlu1 %v204_v15  ;;  %v618_v15 = vld [vmem:[#allocation11 + $0x30] sm:$0xff] }
  0xc1   :  { %v197_v16 = vpop.f32.mrf.mxu0 }
  0xc2   :  { %v902_v17 = vadd.f32 %v197_v16, %v137_v12  ;;  %v617_v16 = vld [vmem:[#allocation11 + $0x28] sm:$0xff] }
  0xc4   :  { %202 = vadd.xlane.f32.xlu0 %v902_v17  ;;  %v205_v18 = vmul.f32 %v902_v17, %v902_v17 }
  0xc6   :  { %208 = vadd.xlane.f32.xlu1 %v205_v18  ;;  %v615_v18 = vld [vmem:[#allocation11 + $0x18] sm:$0xff] }
 0x12f   :  { %v201_v24 = vpop.xlane.xlu0 %200 }
 0x130   :  { %v210_v25 = vmul.f32 0.015625, %v201_v24 }
 0x131   :  { %v207_v27 = vpop.xlane.xlu1 %206 }
 0x132   :  { %v214_v28 = vmul.f32 %v210_v25, %v210_v25  ;;  %v212_v29 = vmul.f32 0.015625, %v207_v27  ;;  %v218_v49 = vsub.f32 %v196_v14, %v210_v25  ;;  %v619_v14 = vld [vmem:[#allocation11 + $0x38] sm:$0xff]  ;;  %v613_v25 = vld [vmem:[#allocation11 + $0x8] sm:$0xff] }
 0x133   :  { %462 = vmatpush.bf16.msra.mxu2 %v619_v14 }
 0x134   :  { %v216_v31 = vsub.f32 %v212_v29, %v214_v28  ;;  %v612_v28 = vld [vmem:[#allocation11] sm:$0xff] }
 0x136   :  { %v220_v32 = vadd.f32 1e-05, %v216_v31 }
 0x137   :  { %v203_v34 = vpop.xlane.xlu0 %202  ;;  %463 = vmatpush.bf16.msra.mxu2 %v618_v15 }
 0x138   :  { %632 = vrsqrt.f32 %v220_v32  ;;  %v211_v35 = vmul.f32 0.015625, %v203_v34  ;;  %vm228_vm1 = vweird.f32 %v220_v32 }
 0x139   :  { %v209_v36 = vpop.xlane.xlu1 %208 }
 0x13a   :  { %v215_v37 = vmul.f32 %v211_v35, %v211_v35  ;;  %v213_v38 = vmul.f32 0.015625, %v209_v36  ;;  %v219_v59 = vsub.f32 %v902_v17, %v211_v35  ;;  %v616_v17 = vld [vmem:[#allocation11 + $0x20] sm:$0xff] }
 0x13b   :  { %464 = vmatpush.bf16.msra.mxu2 %v617_v16 }
 0x13c   :  { %v217_v39 = vsub.f32 %v213_v38, %v215_v37 }
 0x13e   :  { %v633_v40 = vpop.eup %632  ;;  %v221_v41 = vadd.f32 1e-05, %v217_v39 }
 0x13f   :  { %v223_v42 = vmul.f32 %v633_v40, %v220_v32  ;;  %vm229_vm0 = vweird.f32 %v633_v40  ;;  %465 = vmatpush.bf16.msra.mxu2 %v616_v17 }
 0x140   :  { %634 = vrsqrt.f32 %v221_v41  ;;  %vm230_vm2 = vmor %vm228_vm1, %vm229_vm0  ;;  %vm238_vm4 = vweird.f32 %v221_v41 }
 0x141   :  { %v224_v43 = vmul.f32 %v633_v40, %v223_v42 }
 0x143   :  { %v225_v44 = vmul.f32 0.5, %v224_v43  ;;  %466 = vmatpush.bf16.msra.mxu2 %v615_v18 }
 0x145   :  { %v226_v45 = vsub.f32 1.5, %v225_v44 }
 0x146   :  { %v635_v46 = vpop.eup %634 }
 0x147   :  { %v227_v47 = vmul.f32 %v633_v40, %v226_v45  ;;  %v233_v48 = vmul.f32 %v635_v46, %v221_v41  ;;  %vm239_vm3 = vweird.f32 %v635_v46  ;;  %467 = vmatpush.bf16.msra.mxu2 %v614_v21 }
 0x148   :  { %vm240_vm5 = vmor %vm238_vm4, %vm239_vm3 }
 0x149   :  { %v231_v50 = vsel %vm230_vm2, %v633_v40, %v227_v47  ;;  %v234_v51 = vmul.f32 %v635_v46, %v233_v48  ;;  %v381_v47 = vperm.slane %v910_v6, 1 }
 0x14a   :  { %v242_v53 = vmul.f32 %v231_v50, %v218_v49 }
 0x14b   :  { %v235_v54 = vmul.f32 0.5, %v234_v51  ;;  %468 = vmatpush.bf16.msra.mxu2 %v613_v25  ;;  %v384_v51 = vperm.slane %v910_v6, 2 }
 0x14c   :  { %v245_v57 = vmul.f32 %v244_v52, %v242_v53 }
 0x14d   :  { %v236_v55 = vsub.f32 1.5, %v235_v54 }
 0x14e   :  { %v248_v62 = vadd.f32 %v247_v56, %v245_v57 }
 0x14f   :  { %v237_v58 = vmul.f32 %v635_v46, %v236_v55  ;;  %469 = vmatpush.bf16.msra.mxu2 %v612_v28 }
 0x150   :  { %v252_v1 = vmul.f32 0.01, %v248_v62  ;;  %vm250_vm6 = vcmp.ge.f32.partialorder %v248_v62, 0.0 }
 0x151   :  { %v241_v60 = vsel %vm240_vm5, %v635_v46, %v237_v58 }
 0x152   :  { %v243_v61 = vmul.f32 %v241_v60, %v219_v59  ;;  %v254_v3 = vsel %vm250_vm6, %v248_v62, %v252_v1  ;;  %v631_v1 = vld [vmem:[%s936_s6] ss:$0 sm:$0xff] }
 0x154   :  { %v246_v63 = vmul.f32 %v244_v52, %v243_v61 }
 0x156   :  { %v249_v0 = vadd.f32 %v247_v56, %v246_v63 }
 0x158   :  { %vm251_vm7 = vcmp.ge.f32.partialorder %v249_v0, 0.0  ;;  %v253_v2 = vmul.f32 0.01, %v249_v0 }
 0x15a   :  { %v255_v4 = vsel %vm251_vm7, %v249_v0, %v253_v2 }
 0x15b   :  { %v273_v5 = vpack.c.bf16 %v255_v4, %v254_v3 }
 0x15d   :  { %331 = vmatmul.bf16.vlgmr.msra.gmra.mxu1 %v273_v5 }
 0x1da   :  { %v332_v8 = vpop.f32.mrf.mxu1 }
 0x1db   :  { %v333_v9 = vadd.f32 %v332_v8, %v274_v7 }
 0x1dd   :  { %337 = vadd.xlane.f32.xlu2 %v333_v9  ;;  %v341_v10 = vmul.f32 %v333_v9, %v333_v9 }
 0x1df   :  { %343 = vadd.xlane.f32.xlu0 %v341_v10 }
 0x1e2   :  { %v334_v11 = vpop.f32.mrf.mxu1 }
 0x1e3   :  { %v913_v12 = vadd.f32 %v334_v11, %v274_v7 }
 0x1e5   :  { %339 = vadd.xlane.f32.xlu2 %v913_v12  ;;  %v342_v13 = vmul.f32 %v913_v12, %v913_v12 }
 0x1e7   :  { %345 = vadd.xlane.f32.xlu1 %v342_v13 }
 0x250   :  { %v338_v19 = vpop.xlane.xlu2 %337 }
 0x251   :  { %v347_v20 = vmul.f32 0.03125, %v338_v19 }
 0x252   :  { %v344_v22 = vpop.xlane.xlu0 %343 }
 0x253   :  { %v351_v23 = vmul.f32 %v347_v20, %v347_v20  ;;  %v349_v24 = vmul.f32 0.03125, %v344_v22  ;;  %v355_v44 = vsub.f32 %v333_v9, %v347_v20 }
 0x255   :  { %v353_v26 = vsub.f32 %v349_v24, %v351_v23 }
 0x257   :  { %v357_v27 = vadd.f32 1e-05, %v353_v26 }
 0x258   :  { %v340_v29 = vpop.xlane.xlu2 %339 }
 0x259   :  { %636 = vrsqrt.f32 %v357_v27  ;;  %v348_v30 = vmul.f32 0.03125, %v340_v29  ;;  %vm365_vm9 = vweird.f32 %v357_v27 }
 0x25a   :  { %v346_v31 = vpop.xlane.xlu1 %345 }
 0x25b   :  { %v352_v32 = vmul.f32 %v348_v30, %v348_v30  ;;  %v350_v33 = vmul.f32 0.03125, %v346_v31  ;;  %v356_v54 = vsub.f32 %v913_v12, %v348_v30 }
 0x25d   :  { %v354_v34 = vsub.f32 %v350_v33, %v352_v32 }
 0x25f   :  { %v637_v35 = vpop.eup %636  ;;  %v358_v36 = vadd.f32 1e-05, %v354_v34 }
 0x260   :  { %v360_v37 = vmul.f32 %v637_v35, %v357_v27  ;;  %vm366_vm8 = vweird.f32 %v637_v35 }
 0x261   :  { %638 = vrsqrt.f32 %v358_v36  ;;  %vm367_vm10 = vmor %vm365_vm9, %vm366_vm8  ;;  %vm375_vm12 = vweird.f32 %v358_v36 }
 0x262   :  { %v361_v38 = vmul.f32 %v637_v35, %v360_v37 }
 0x264   :  { %v362_v39 = vmul.f32 0.5, %v361_v38 }
 0x266   :  { %v363_v40 = vsub.f32 1.5, %v362_v39 }
 0x267   :  { %v639_v41 = vpop.eup %638 }
 0x268   :  { %v364_v42 = vmul.f32 %v637_v35, %v363_v40  ;;  %v370_v43 = vmul.f32 %v639_v41, %v358_v36  ;;  %vm376_vm11 = vweird.f32 %v639_v41 }
 0x269   :  { %vm377_vm13 = vmor %vm375_vm12, %vm376_vm11 }
 0x26a   :  { %v368_v45 = vsel %vm367_vm10, %v637_v35, %v364_v42  ;;  %v371_v46 = vmul.f32 %v639_v41, %v370_v43 }
 0x26b   :  { %v379_v48 = vmul.f32 %v368_v45, %v355_v44 }
 0x26c   :  { %v372_v49 = vmul.f32 0.5, %v371_v46 }
 0x26d   :  { %v382_v52 = vmul.f32 %v381_v47, %v379_v48 }
 0x26e   :  { %v373_v50 = vsub.f32 1.5, %v372_v49 }
 0x26f   :  { %v385_v57 = vadd.f32 %v384_v51, %v382_v52 }
 0x270   :  { %v374_v53 = vmul.f32 %v639_v41, %v373_v50 }
 0x271   :  { %v389_v60 = vmul.f32 0.01, %v385_v57  ;;  %vm387_vm14 = vcmp.ge.f32.partialorder %v385_v57, 0.0 }
 0x272   :  { %v378_v55 = vsel %vm377_vm13, %v639_v41, %v374_v53 }
 0x273   :  { %v380_v56 = vmul.f32 %v378_v55, %v356_v54  ;;  %v391_v62 = vsel %vm387_vm14, %v385_v57, %v389_v60 }
 0x275   :  { %v383_v58 = vmul.f32 %v381_v47, %v380_v56 }
 0x277   :  { %v386_v59 = vadd.f32 %v384_v51, %v383_v58 }
 0x279   :  { %vm388_vm15 = vcmp.ge.f32.partialorder %v386_v59, 0.0  ;;  %v390_v61 = vmul.f32 0.01, %v386_v59 }
 0x27b   :  { %v392_v63 = vsel %vm388_vm15, %v386_v59, %v390_v61 }
 0x27c   :  { %v393_v0 = vpack.c.bf16 %v392_v63, %v391_v62 }
 0x27e   :  { %470 = vmatmul.bf16.vlgmr.msra.gmra.mxu2 %v393_v0 }
 0x301   :  { %v471_v2 = vpop.f32.mrf.mxu2 }
 0x302   :  { %v472_v3 = vadd.f32 %v631_v1, %v471_v2 }
 0x304   :  { %476 = vst [vmem:[#allocation13] sm:$0xff] %v472_v3 }
 0x309   :  { %v473_v4 = vpop.f32.mrf.mxu2 }
 0x30a   :  { %v474_v5 = vadd.f32 %v631_v1, %v473_v4 }
 0x30c   :  { %477 = vst [vmem:[#allocation13 + $0x8] sm:$0xff] %v474_v5 }
 0x30d   :  { %490 = dma.vmem_to_hbm [thread:$0]  %s483_s9, 256, %s485_s12, [#allocation4], %s823_s19, %s823_s19, %s824_s20  }
 0x30e   :  { %816 = dma.done.wait [#allocation4], 256  }
 0x30f   :  { %817 = vsyncadd [#allocation4], 4294967040 }
 0x310   :  { %495 = vsyncpa [#allocation3], 1 }
 0x311   :  { %496 = vsyncpa [#allocation6], 1 }
 0x312   :  { %497 = vsyncpa [#allocation9], 1 }
 0x313   :  { %498 = vsyncpa [#allocation12], 1 }
 0x314   :  { %499 = vsyncpa [#allocation4], 1 }

</bundles_post_ra>
